<compile_context>
chip_gen: v7x
topology: tpu7x:2x2x1
jax: 0.10.0
libtpu: 0.0.40
codegen_flags: <defaults>
</compile_context>

<pallas_src>
import jax
import jax.numpy as jnp
import numpy as np
from jax.experimental import pallas as pl
from jax.experimental.pallas import tpu as pltpu


# --------------------------------------------------------------------------- #
# Kernel
# --------------------------------------------------------------------------- #
def attention_kernel(emb1_ref, emb2_ref, w_ref, u_ref, out_ref, alpha_ref):
    e1 = emb1_ref[...]                       # (tb, F), native dtype
    e2 = emb2_ref[...]                       # (tb, F)
    w = w_ref[...]                           # (F, D), resident across grid steps
    u_row = u_ref[...].astype(jnp.float32)   # (1, D), lane-major (no transpose)

    # Two M=tb matmuls against the same resident RHS (no (2tb,F) concat copy);
    # f32 accumulation regardless of input dtype.  (Note for v5e: tanh/exp run
    # on the single EUP slot in f32 — fine at these D.)
    v1 = jnp.tanh(jnp.dot(e1, w, preferred_element_type=jnp.float32))   # (tb, D)
    v2 = jnp.tanh(jnp.dot(e2, w, preferred_element_type=jnp.float32))   # (tb, D)

    # vu = v @ u_omega as a lane reduction; "+1e-6" mirrors the PyTorch code.
    s1 = jnp.sum(v1 * u_row, axis=-1, keepdims=True) + 1e-6             # (tb, 1)
    s2 = jnp.sum(v2 * u_row, axis=-1, keepdims=True) + 1e-6             # (tb, 1)

    # 2-way softmax over the branch axis.  EXACT reciprocal (approx=False):
    # the approx EUP rcp gave ~3e-3 relative error in alpha and failed checks.
    m = jnp.maximum(s1, s2)
    x1 = jnp.exp(s1 - m)
    x2 = jnp.exp(s2 - m)
    inv = pl.reciprocal(x1 + x2)                                         # exact
    a1 = x1 * inv                                                        # (tb, 1)
    a2 = x2 * inv                                                        # (tb, 1)

    # emb^T @ alpha  ==  a1*emb1 + a2*emb2 ; accumulate in f32, store out dtype.
    out = a1 * e1.astype(jnp.float32) + a2 * e2.astype(jnp.float32)
    out_ref[...] = out.astype(out_ref.dtype)

    # TODO(synk): for F % 128 != 0 the out store is a masked vst; a lane-folded
    # (B*F/128, 128) output / (2, B)-transposed alpha layout would make the
    # stores lane-dense but adds HBM traffic or an in-kernel relayout at these
    # small F, so it is intentionally skipped here.
    alpha_ref[:, 0:1] = a1.astype(alpha_ref.dtype)
    alpha_ref[:, 1:2] = a2.astype(alpha_ref.dtype)


# --------------------------------------------------------------------------- #
# Tiling / VMEM planning helpers
# --------------------------------------------------------------------------- #
def _vmem_plan(F, D, in_isz, out_isz):
    """Returns (vmem budget bytes ~25% headroom, resident-weight bytes, per-row tile bytes)."""
    try:
        capacity = int(pltpu.get_tpu_info().vmem_capacity_bytes)
    except Exception:
        capacity = 64 << 20  # conservative default: v7x per-TC VMEM
    budget = (capacity * 3) // 4
    weight_bytes = F * D * in_isz + D * 4               # single-buffered residents
    per_row = (
        2 * 2 * F * in_isz      # emb1 + emb2 input blocks, double-buffered
        + 2 * F * out_isz       # out block, double-buffered
        + 2 * 2 * 4             # alpha block, double-buffered
        + F * 4 + 2 * D * 4     # in-kernel f32 temporaries (out acc, v1, v2)
        + 64                    # softmax columns / slack
    )
    return budget, weight_bytes, per_row


def _num_tensorcores_per_chip():
    """2 on megacore-style chips (v7x, v4/v5p) where grid sharding pays off, else 1."""
    try:
        kind = jax.devices()[0].device_kind.lower()
    except Exception:
        return 1
    return 2 if any(t in kind for t in ("v7", "v4", "v5p")) else 1


def _pick_tb(B, max_tb, prefer_multi):
    """Largest divisor of B that is <= max_tb and (8,·)-aligned (or == B).
    On 2-TC chips, prefer >= 2 grid steps so megacore can shard the axis."""
    divs = [d for d in range(1, B + 1) if B % d == 0]
    ok = [d for d in divs if d <= max_tb and (d % 8 == 0 or d == B)]
    if not ok:
        # TODO(synk): for prime/awkward B larger than the VMEM budget, pad B in
        # the wrapper and mask the tail instead of one oversized tile.
        return B
    if prefer_multi:
        multi = [d for d in ok if B // d >= 2]
        if multi:
            return max(multi)
    return max(ok)


# --------------------------------------------------------------------------- #
# Wrapper
# --------------------------------------------------------------------------- #
def attention_layer(emb1, emb2, w_omega, u_omega, *, tb=None):
    B, F = emb1.shape
    Fw, D = w_omega.shape
    assert Fw == F and u_omega.shape == (D, 1)

    out_dtype = emb1.dtype
    in_isz = jnp.dtype(emb1.dtype).itemsize
    out_isz = jnp.dtype(out_dtype).itemsize

    budget, weight_bytes, per_row = _vmem_plan(F, D, in_isz, out_isz)
    max_tb = max(8, (budget - weight_bytes) // max(per_row, 1))
    max_tb = min(int(max_tb) - int(max_tb) % 8, 2048)

    if tb is None:
        tb = _pick_tb(B, max_tb=max_tb,
                      prefer_multi=_num_tensorcores_per_chip() >= 2)
    assert B % tb == 0 and (tb % 8 == 0 or tb == B)

    usage = weight_bytes + tb * per_row
    vmem_limit = int(min(budget, max(usage + (4 << 20), 16 << 20)))

    # Lane-major u so the kernel broadcasts it with no in-kernel transpose.
    u_row = u_omega.reshape(1, D)
    grid = (B // tb,)

    cost = pl.CostEstimate(
        flops=int(4 * B * F * D + 4 * B * D + 6 * B * F),
        transcendentals=int(2 * B * (D + 1)),
        bytes_accessed=int(2 * B * F * in_isz + B * F * out_isz
                           + F * D * in_isz + D * 4 + 2 * B * out_isz),
    )

    def run(single_buffer_weights):
        if single_buffer_weights:
            # Grid-invariant weights: single-buffer (default 2-deep buffering
            # would only double their VMEM footprint).
            w_spec = pl.BlockSpec((F, D), lambda i: (0, 0),
                                  pipeline_mode=pl.Buffered(1))
            u_spec = pl.BlockSpec((1, D), lambda i: (0, 0),
                                  pipeline_mode=pl.Buffered(1))
        else:
            w_spec = pl.BlockSpec((F, D), lambda i: (0, 0))
            u_spec = pl.BlockSpec((1, D), lambda i: (0, 0))

        return pl.pallas_call(
            attention_kernel,
            out_shape=(
                jax.ShapeDtypeStruct((B, F), out_dtype),  # emb_combined
                jax.ShapeDtypeStruct((B, 2), out_dtype),  # alpha
            ),
            grid_spec=pltpu.PrefetchScalarGridSpec(
                num_scalar_prefetch=0,
                grid=grid,
                in_specs=[
                    pl.BlockSpec((tb, F), lambda i: (i, 0)),   # emb1 tile
                    pl.BlockSpec((tb, F), lambda i: (i, 0)),   # emb2 tile
                    w_spec,                                    # w_omega (resident)
                    u_spec,                                    # u_omega row (resident)
                ],
                out_specs=[
                    pl.BlockSpec((tb, F), lambda i: (i, 0)),
                    pl.BlockSpec((tb, 2), lambda i: (i, 0)),
                ],
            ),
            compiler_params=pltpu.CompilerParams(
                dimension_semantics=("parallel",),
                vmem_limit_bytes=vmem_limit,
            ),
            cost_estimate=cost,
        )(emb1, emb2, w_omega, u_row)

    try:
        return run(single_buffer_weights=True)
    except Exception:
        # Fallback for environments where BlockSpec pipeline_mode / Buffered(1)
        # is unavailable — correctness over the (small) VMEM saving.
        return run(single_buffer_weights=False)


# --------------------------------------------------------------------------- #
# Reference + demo
# --------------------------------------------------------------------------- #
def _xavier_uniform(key, shape):
    fan_in, fan_out = shape
    bound = float(np.sqrt(6.0 / (fan_in + fan_out)))
    return jax.random.uniform(key, shape, jnp.float32, minval=-bound, maxval=bound)


def _reference(emb1, emb2, w_omega, u_omega):
    emb = jnp.stack([emb1, emb2], axis=1)                       # (B, 2, F)
    v = jnp.tanh(jnp.einsum("bsf,fd->bsd", emb, w_omega))       # (B, 2, D)
    vu = jnp.einsum("bsd,do->bso", v, u_omega)[..., 0]          # (B, 2)
    alpha = jax.nn.softmax(vu + 1e-6, axis=1)                   # (B, 2)
    out = jnp.einsum("bsf,bs->bf", emb, alpha)                  # (B, F)
    return out, alpha


if __name__ == "__main__":
    B, in_feat, out_feat = 16, 32, 16

    key = jax.random.PRNGKey(0)
    k1, k2, kw, ku = jax.random.split(key, 4)
    emb1 = jax.random.normal(k1, (B, in_feat), jnp.float32)
    emb2 = jax.random.normal(k2, (B, in_feat), jnp.float32)
    w_omega = _xavier_uniform(kw, (in_feat, out_feat))
    u_omega = _xavier_uniform(ku, (out_feat, 1))

    out, alpha = attention_layer(emb1, emb2, w_omega, u_omega)
    out = jax.block_until_ready(out)
    alpha = jax.block_until_ready(alpha)

    out_ref, alpha_ref = _reference(emb1, emb2, w_omega, u_omega)
    # Softmax reciprocal is exact now; the remaining tolerance only covers
    # MXU-vs-XLA f32 matmul pass differences.
    np.testing.assert_allclose(np.asarray(out), np.asarray(out_ref),
                               rtol=2e-3, atol=2e-3)
    np.testing.assert_allclose(np.asarray(alpha), np.asarray(alpha_ref),
                               rtol=2e-3, atol=2e-3)
    assert np.allclose(np.asarray(alpha).sum(axis=1), 1.0, atol=1e-5)

    print("KERNEL_OK")
</pallas_src>

<mosaic_0001>
module attributes {stable_mosaic.version = 11 : i64} {
  func.func @attention_kernel(%arg0: i32, %arg1: memref<16x32xf32, #tpu.memory_space<vmem>>, %arg2: memref<16x32xf32, #tpu.memory_space<vmem>>, %arg3: memref<32x16xf32, #tpu.memory_space<vmem>>, %arg4: memref<1x16xf32, #tpu.memory_space<vmem>>, %arg5: memref<16x32xf32, #tpu.memory_space<vmem>>, %arg6: memref<16x2xf32, #tpu.memory_space<vmem>>) attributes {dimension_semantics = [#tpu.dimension_semantics<parallel>], iteration_bounds = array<i64: 1>, scalar_prefetch = 0 : i64, scratch_operands = 0 : i64, tpu.core_type = #tpu.core_type<tc>, window_params = [{transform_indices = @transform_0, window_bounds = array<i64: 16, 32>}, {transform_indices = @transform_1, window_bounds = array<i64: 16, 32>}, {pipeline_mode = #tpu.pipeline_mode<synchronous>, transform_indices = @transform_2, window_bounds = array<i64: 32, 16>}, {pipeline_mode = #tpu.pipeline_mode<synchronous>, transform_indices = @transform_3, window_bounds = array<i64: 1, 16>}, {transform_indices = @transform_4, window_bounds = array<i64: 16, 32>}, {transform_indices = @transform_5, window_bounds = array<i64: 16, 2>}]} {
    %c0 = arith.constant 0 : index
    %c0_0 = arith.constant 0 : index
    %0 = vector.load %arg1[%c0, %c0_0] : memref<16x32xf32, #tpu.memory_space<vmem>>, vector<16x32xf32>
    %c0_1 = arith.constant 0 : index
    %c0_2 = arith.constant 0 : index
    %1 = vector.load %arg2[%c0_1, %c0_2] : memref<16x32xf32, #tpu.memory_space<vmem>>, vector<16x32xf32>
    %c0_3 = arith.constant 0 : index
    %c0_4 = arith.constant 0 : index
    %2 = vector.load %arg3[%c0_3, %c0_4] : memref<32x16xf32, #tpu.memory_space<vmem>>, vector<32x16xf32>
    %c0_5 = arith.constant 0 : index
    %c0_6 = arith.constant 0 : index
    %3 = vector.load %arg4[%c0_5, %c0_6] : memref<1x16xf32, #tpu.memory_space<vmem>>, vector<1x16xf32>
    %cst = arith.constant dense<0.000000e+00> : vector<16x16xf32>
    %4 = tpu.matmul %0, %2, %cst {dimension_numbers = #tpu.dot_dimension_numbers<[1], [0], [0], [1], [0, 0, 1, 1], [], []>} : vector<16x32xf32>, vector<32x16xf32>, vector<16x16xf32> -> vector<16x16xf32>
    %5 = math.tanh %4 : vector<16x16xf32>
    %cst_7 = arith.constant dense<0.000000e+00> : vector<16x16xf32>
    %6 = tpu.matmul %1, %2, %cst_7 {dimension_numbers = #tpu.dot_dimension_numbers<[1], [0], [0], [1], [0, 0, 1, 1], [], []>} : vector<16x32xf32>, vector<32x16xf32>, vector<16x16xf32> -> vector<16x16xf32>
    %7 = math.tanh %6 : vector<16x16xf32>
    %8 = vector.broadcast %3 : vector<1x16xf32> to vector<16x16xf32>
    %9 = arith.mulf %5, %8 : vector<16x16xf32>
    %cst_8 = arith.constant dense<0.000000e+00> : vector<16xf32>
    %10 = vector.multi_reduction <add>, %9, %cst_8 [1] : vector<16x16xf32> to vector<16xf32>
    %11 = vector.shape_cast %10 : vector<16xf32> to vector<16x1xf32>
    %cst_9 = arith.constant 9.99999997E-7 : f32
    %12 = vector.broadcast %cst_9 : f32 to vector<16x1xf32>
    %13 = arith.addf %11, %12 : vector<16x1xf32>
    %14 = vector.broadcast %3 : vector<1x16xf32> to vector<16x16xf32>
    %15 = arith.mulf %7, %14 : vector<16x16xf32>
    %cst_10 = arith.constant dense<0.000000e+00> : vector<16xf32>
    %16 = vector.multi_reduction <add>, %15, %cst_10 [1] : vector<16x16xf32> to vector<16xf32>
    %17 = vector.shape_cast %16 : vector<16xf32> to vector<16x1xf32>
    %cst_11 = arith.constant 9.99999997E-7 : f32
    %18 = vector.broadcast %cst_11 : f32 to vector<16x1xf32>
    %19 = arith.addf %17, %18 : vector<16x1xf32>
    %20 = arith.maximumf %13, %19 : vector<16x1xf32>
    %21 = arith.subf %13, %20 : vector<16x1xf32>
    %22 = math.exp %21 : vector<16x1xf32>
    %23 = arith.subf %19, %20 : vector<16x1xf32>
    %24 = math.exp %23 : vector<16x1xf32>
    %25 = arith.addf %22, %24 : vector<16x1xf32>
    %26 = tpu.reciprocal %25 : vector<16x1xf32> -> vector<16x1xf32>
    %27 = arith.mulf %22, %26 : vector<16x1xf32>
    %28 = arith.mulf %24, %26 : vector<16x1xf32>
    %29 = vector.broadcast %27 : vector<16x1xf32> to vector<16x32xf32>
    %30 = arith.mulf %29, %0 : vector<16x32xf32>
    %31 = vector.broadcast %28 : vector<16x1xf32> to vector<16x32xf32>
    %32 = arith.mulf %31, %1 : vector<16x32xf32>
    %33 = arith.addf %30, %32 : vector<16x32xf32>
    %c0_12 = arith.constant 0 : index
    %c0_13 = arith.constant 0 : index
    %34 = vector.load %arg5[%c0_12, %c0_13] : memref<16x32xf32, #tpu.memory_space<vmem>>, vector<16x32xf32>
    tpu.vector_store %arg5[%c0_12, %c0_13], %33 {strides = array<i32>} : memref<16x32xf32, #tpu.memory_space<vmem>>, vector<16x32xf32>,
    %c0_14 = arith.constant 0 : index
    %c0_15 = arith.constant 0 : index
    %35 = vector.load %arg6[%c0_14, %c0_15] : memref<16x2xf32, #tpu.memory_space<vmem>>, vector<16x1xf32>
    tpu.vector_store %arg6[%c0_14, %c0_15], %27 {strides = array<i32>} : memref<16x2xf32, #tpu.memory_space<vmem>>, vector<16x1xf32>,
    %c0_16 = arith.constant 0 : index
    %c1 = arith.constant 1 : index
    %36 = vector.load %arg6[%c0_16, %c1] : memref<16x2xf32, #tpu.memory_space<vmem>>, vector<16x1xf32>
    tpu.vector_store %arg6[%c0_16, %c1], %28 {strides = array<i32>} : memref<16x2xf32, #tpu.memory_space<vmem>>, vector<16x1xf32>,
    return
  }
  func.func @transform_0(%arg0: i32) -> (i32, i32) {
    %c0_i32 = arith.constant 0 : i32
    %c0_i32_0 = arith.constant 0 : i32
    return %arg0, %c0_i32 : i32, i32
  }
  func.func @transform_1(%arg0: i32) -> (i32, i32) {
    %c0_i32 = arith.constant 0 : i32
    %c0_i32_0 = arith.constant 0 : i32
    return %arg0, %c0_i32 : i32, i32
  }
  func.func @transform_2(%arg0: i32) -> (i32, i32) {
    %c0_i32 = arith.constant 0 : i32
    %c0_i32_0 = arith.constant 0 : i32
    %c0_i32_1 = arith.constant 0 : i32
    return %c0_i32, %c0_i32_0 : i32, i32
  }
  func.func @transform_3(%arg0: i32) -> (i32, i32) {
    %c0_i32 = arith.constant 0 : i32
    %c0_i32_0 = arith.constant 0 : i32
    %c0_i32_1 = arith.constant 0 : i32
    return %c0_i32, %c0_i32_0 : i32, i32
  }
  func.func @transform_4(%arg0: i32) -> (i32, i32) {
    %c0_i32 = arith.constant 0 : i32
    %c0_i32_0 = arith.constant 0 : i32
    return %arg0, %c0_i32 : i32, i32
  }
  func.func @transform_5(%arg0: i32) -> (i32, i32) {
    %c0_i32 = arith.constant 0 : i32
    %c0_i32_0 = arith.constant 0 : i32
    return %arg0, %c0_i32 : i32, i32
  }
}

module attributes {stable_mosaic.version = 11 : i64} {
  func.func @attention_kernel(%arg0: i32, %arg1: memref<16x32xf32, #tpu.memory_space<vmem>>, %arg2: memref<16x32xf32, #tpu.memory_space<vmem>>, %arg3: memref<32x16xf32, #tpu.memory_space<vmem>>, %arg4: memref<1x16xf32, #tpu.memory_space<vmem>>, %arg5: memref<16x32xf32, #tpu.memory_space<vmem>>, %arg6: memref<16x2xf32, #tpu.memory_space<vmem>>) attributes {dimension_semantics = [#tpu.dimension_semantics<parallel>], iteration_bounds = array<i64: 1>, scalar_prefetch = 0 : i64, scratch_operands = 0 : i64, tpu.core_type = #tpu.core_type<tc>, window_params = [{transform_indices = @transform_0, window_bounds = array<i64: 16, 32>}, {transform_indices = @transform_1, window_bounds = array<i64: 16, 32>}, {pipeline_mode = #tpu.pipeline_mode<synchronous>, transform_indices = @transform_2, window_bounds = array<i64: 32, 16>}, {pipeline_mode = #tpu.pipeline_mode<synchronous>, transform_indices = @transform_3, window_bounds = array<i64: 1, 16>}, {transform_indices = @transform_4, window_bounds = array<i64: 16, 32>}, {transform_indices = @transform_5, window_bounds = array<i64: 16, 2>}]} {
    %c0 = arith.constant 0 : index
    %c0_0 = arith.constant 0 : index
    %0 = vector.load %arg1[%c0, %c0_0] : memref<16x32xf32, #tpu.memory_space<vmem>>, vector<16x32xf32>
    %c0_1 = arith.constant 0 : index
    %c0_2 = arith.constant 0 : index
    %1 = vector.load %arg2[%c0_1, %c0_2] : memref<16x32xf32, #tpu.memory_space<vmem>>, vector<16x32xf32>
    %c0_3 = arith.constant 0 : index
    %c0_4 = arith.constant 0 : index
    %2 = vector.load %arg3[%c0_3, %c0_4] : memref<32x16xf32, #tpu.memory_space<vmem>>, vector<32x16xf32>
    %c0_5 = arith.constant 0 : index
    %c0_6 = arith.constant 0 : index
    %3 = vector.load %arg4[%c0_5, %c0_6] : memref<1x16xf32, #tpu.memory_space<vmem>>, vector<1x16xf32>
    %cst = arith.constant dense<0.000000e+00> : vector<16x16xf32>
    %4 = tpu.matmul %0, %2, %cst {dimension_numbers = #tpu.dot_dimension_numbers<[1], [0], [0], [1], [0, 0, 1, 1], [], []>} : vector<16x32xf32>, vector<32x16xf32>, vector<16x16xf32> -> vector<16x16xf32>
    %5 = math.tanh %4 : vector<16x16xf32>
    %cst_7 = arith.constant dense<0.000000e+00> : vector<16x16xf32>
    %6 = tpu.matmul %1, %2, %cst_7 {dimension_numbers = #tpu.dot_dimension_numbers<[1], [0], [0], [1], [0, 0, 1, 1], [], []>} : vector<16x32xf32>, vector<32x16xf32>, vector<16x16xf32> -> vector<16x16xf32>
    %7 = math.tanh %6 : vector<16x16xf32>
    %8 = vector.broadcast %3 : vector<1x16xf32> to vector<16x16xf32>
    %9 = arith.mulf %5, %8 : vector<16x16xf32>
    %cst_8 = arith.constant dense<0.000000e+00> : vector<16xf32>
    %10 = vector.multi_reduction <add>, %9, %cst_8 [1] : vector<16x16xf32> to vector<16xf32>
    %11 = vector.shape_cast %10 : vector<16xf32> to vector<16x1xf32>
    %cst_9 = arith.constant 9.99999997E-7 : f32
    %12 = vector.broadcast %cst_9 : f32 to vector<16x1xf32>
    %13 = arith.addf %11, %12 : vector<16x1xf32>
    %14 = vector.broadcast %3 : vector<1x16xf32> to vector<16x16xf32>
    %15 = arith.mulf %7, %14 : vector<16x16xf32>
    %cst_10 = arith.constant dense<0.000000e+00> : vector<16xf32>
    %16 = vector.multi_reduction <add>, %15, %cst_10 [1] : vector<16x16xf32> to vector<16xf32>
    %17 = vector.shape_cast %16 : vector<16xf32> to vector<16x1xf32>
    %cst_11 = arith.constant 9.99999997E-7 : f32
    %18 = vector.broadcast %cst_11 : f32 to vector<16x1xf32>
    %19 = arith.addf %17, %18 : vector<16x1xf32>
    %20 = arith.maximumf %13, %19 : vector<16x1xf32>
    %21 = arith.subf %13, %20 : vector<16x1xf32>
    %22 = math.exp %21 : vector<16x1xf32>
    %23 = arith.subf %19, %20 : vector<16x1xf32>
    %24 = math.exp %23 : vector<16x1xf32>
    %25 = arith.addf %22, %24 : vector<16x1xf32>
    %26 = tpu.reciprocal %25 : vector<16x1xf32> -> vector<16x1xf32>
    %27 = arith.mulf %22, %26 : vector<16x1xf32>
    %28 = arith.mulf %24, %26 : vector<16x1xf32>
    %29 = vector.broadcast %27 : vector<16x1xf32> to vector<16x32xf32>
    %30 = arith.mulf %29, %0 : vector<16x32xf32>
    %31 = vector.broadcast %28 : vector<16x1xf32> to vector<16x32xf32>
    %32 = arith.mulf %31, %1 : vector<16x32xf32>
    %33 = arith.addf %30, %32 : vector<16x32xf32>
    %c0_12 = arith.constant 0 : index
    %c0_13 = arith.constant 0 : index
    %34 = vector.load %arg5[%c0_12, %c0_13] : memref<16x32xf32, #tpu.memory_space<vmem>>, vector<16x32xf32>
    tpu.vector_store %arg5[%c0_12, %c0_13], %33 {strides = array<i32>} : memref<16x32xf32, #tpu.memory_space<vmem>>, vector<16x32xf32>,
    %c0_14 = arith.constant 0 : index
    %c0_15 = arith.constant 0 : index
    %35 = vector.load %arg6[%c0_14, %c0_15] : memref<16x2xf32, #tpu.memory_space<vmem>>, vector<16x1xf32>
    tpu.vector_store %arg6[%c0_14, %c0_15], %27 {strides = array<i32>} : memref<16x2xf32, #tpu.memory_space<vmem>>, vector<16x1xf32>,
    %c0_16 = arith.constant 0 : index
    %c1 = arith.constant 1 : index
    %36 = vector.load %arg6[%c0_16, %c1] : memref<16x2xf32, #tpu.memory_space<vmem>>, vector<16x1xf32>
    tpu.vector_store %arg6[%c0_16, %c1], %28 {strides = array<i32>} : memref<16x2xf32, #tpu.memory_space<vmem>>, vector<16x1xf32>,
    return
  }
  func.func @transform_0(%arg0: i32) -> (i32, i32) {
    %c0_i32 = arith.constant 0 : i32
    %c0_i32_0 = arith.constant 0 : i32
    return %arg0, %c0_i32 : i32, i32
  }
  func.func @transform_1(%arg0: i32) -> (i32, i32) {
    %c0_i32 = arith.constant 0 : i32
    %c0_i32_0 = arith.constant 0 : i32
    return %arg0, %c0_i32 : i32, i32
  }
  func.func @transform_2(%arg0: i32) -> (i32, i32) {
    %c0_i32 = arith.constant 0 : i32
    %c0_i32_0 = arith.constant 0 : i32
    %c0_i32_1 = arith.constant 0 : i32
    return %c0_i32, %c0_i32_0 : i32, i32
  }
  func.func @transform_3(%arg0: i32) -> (i32, i32) {
    %c0_i32 = arith.constant 0 : i32
    %c0_i32_0 = arith.constant 0 : i32
    %c0_i32_1 = arith.constant 0 : i32
    return %c0_i32, %c0_i32_0 : i32, i32
  }
  func.func @transform_4(%arg0: i32) -> (i32, i32) {
    %c0_i32 = arith.constant 0 : i32
    %c0_i32_0 = arith.constant 0 : i32
    return %arg0, %c0_i32 : i32, i32
  }
  func.func @transform_5(%arg0: i32) -> (i32, i32) {
    %c0_i32 = arith.constant 0 : i32
    %c0_i32_0 = arith.constant 0 : i32
    return %arg0, %c0_i32 : i32, i32
  }
}

</mosaic_0001>

<bundles_post_ra>
// kernel: tpu_custom_call.1
= control target key start
LH: loop header
LB: loop body
LE: loop exit
PB: predicated region body
PF: predicated region fallthrough
CT: control target
= control target key end

     0   :  { %vm29_vm0 = vcmask 261120   ;;  %s487_s0 = inlined_call_operand.vmem [shape: f32[16,32], index: 0, kind: input, shape index: {}]   ;;  %s488_s1 = inlined_call_operand.vmem [shape: f32[16,32], index: 1, kind: input, shape index: {}]   ;;  %s489_s2 = inlined_call_operand.vmem [shape: f32[32,16], index: 2, kind: input, shape index: {}]   ;;  %s490_s3 = inlined_call_operand.vmem [shape: f32[1,16], index: 3, kind: input, shape index: {}]   ;;  %s491_s4 = inlined_call_operand.hbm [shape: f32[16,32], index: 4, kind: output, shape index: {0}]   ;;  %s492_s5 = inlined_call_operand.vmem [shape: f32[16,2], index: 5, kind: output, shape index: {1}]  }
   0x1   :  { %v24_v0 = vld [vmem:[%s489_s2] sm:$0xff]  ;;  %v25_v1 = vld [vmem:[%s489_s2 + $0x8] sm:$0xff]  ;;  %v26_v2 = vld [vmem:[%s489_s2 + $0x10] sm:$0xff] }
   0x2   :  { %v318_v3 = vpack.c.bf16 %v25_v1, %v24_v0  ;;  %v27_v4 = vld [vmem:[%s489_s2 + $0x18] sm:$0xff]  ;;  %v429_v5 = vld [vmem:[%s487_s0] sm:$0xff] }
   0x3   :  { %v434_v6 = vld [vmem:[%s488_s1] sm:$0xff]  ;;  %v322_v7 = vpack.c.bf16 %v27_v4, %v26_v2  ;;  %304 = vmatprep.mubr.msk.f32.mxu0 %vm29_vm0, %v429_v5 }
   0x4   :  { %315 = vmatprep.mubr.msk.f32.mxu1 %vm29_vm0, %v434_v6 }
   0x5   :  { %11 = vsyncpa [#allocation3], 0  ;;  %319 = vmatprep.subr.bf16.mxu0 %v318_v3  ;;  %327 = vmatprep.subr.bf16.mxu1 %v318_v3  ;;  %v443_v8 = vld [vmem:[%s487_s0 + $0x8] sm:$0xff]  ;;  %v283_v15 = vld [vmem:[%s490_s3] ss:$0 sm:$0xff]  ;;  %vm204_vm1 = vcmask 130048  }
   0x6   :  { %321 = vmatpush3.bf16.msra.mxu0 %v318_v3  ;;  %329 = vmatpush3.bf16.msra.mxu1 %v318_v3  ;;  %v448_v9 = vld [vmem:[%s488_s1 + $0x8] sm:$0xff]  ;;  %vm253_vm2 = vcmask 7168   ;;  %vm256_vm3 = vcmask 15368   ;;  %s381_s11 = smov [#allocation2]  }
   0x7   :  { %323 = vmatprep.subr.bf16.mxu0 %v322_v7  ;;  %331 = vmatprep.subr.bf16.mxu1 %v322_v7  ;;  %s264_s12 = sshll.u32 %s381_s11, 4  ;;  %s265_s12 = int_to_ptr.vmem [resolvable:$true] %s264_s12 }
   0x8   :  { %s357_s17 = scalar_lea.vmem %s265_s12, 256  ;;  %p362_p1 = scmp.lt.s32.totalorder %s265_s12, %s265_s12 }
   0x9   :  { %p358_p0 = scmp.ne.s32.totalorder %s265_s12, %s357_s17  ;;  %p363_p2 = scmp.lt.s32.totalorder %s357_s17, %s357_s17 }
   0xa   :  { %325 = vmatpush3.bf16.msra.mxu0 %v322_v7  ;;  %333 = vmatpush3.bf16.msra.mxu1 %v322_v7 }
   0xb   :  { %p364_p3 = por %p363_p2, %p362_p1 }
   0xd   :  { %305 = vmatmul.mubr.msk.f32.vlgmr.msra.gmra.mrb[0].mxu0 %vm29_vm0, %v443_v8  ;;  %316 = vmatmul.mubr.msk.f32.vlgmr.msra.gmra.mrb[0].mxu1 %vm29_vm0, %v448_v9  ;;  %p365_p4 = pnand %p364_p3, %p358_p0 }
  0xe0   :  { %v306_v10 = vpop.f32.mrb[0].mxu0  ;;  %v317_v11 = vpop.f32.mrb[0].mxu1 }
  0xe1   :  { %337 = vtanh.f32 %v306_v10  ;;  %v102_v12 = vpop.f32.mrb[1].mxu0  ;;  %v185_v13 = vpop.f32.mrb[1].mxu1 }
  0xe2   :  { %339 = vtanh.f32 %v317_v11 }
  0xe3   :  { %341 = vtanh.f32 %v102_v12 }
  0xe4   :  { %343 = vtanh.f32 %v185_v13 }
  0xeb   :  { %v338_v14 = vpop.eup %337 }
  0xec   :  { %v340_v16 = vpop.eup %339  ;;  %v203_v22 = vmul.f32 %v338_v14, %v283_v15 }
  0xed   :  { %v342_v17 = vpop.eup %341  ;;  %v214_v24 = vmul.f32 %v340_v16, %v283_v15 }
  0xee   :  { %v344_v18 = vpop.eup %343  ;;  %v202_v19 = vmul.f32 %v342_v17, %v283_v15  ;;  %v208_v25 = vsel %vm204_vm1, %v203_v22, 0.0 }
  0xef   :  { %v213_v20 = vmul.f32 %v344_v18, %v283_v15  ;;  %v218_v26 = vsel %vm204_vm1, %v214_v24, 0.0 }
  0xf0   :  { %v205_v21 = vsel %vm204_vm1, %v202_v19, 0.0 }
  0xf1   :  { %v215_v23 = vsel %vm204_vm1, %v213_v20, 0.0  ;;  %206 = vadd.xlane.f32.xlu0 %v205_v21 }
  0xf2   :  { %216 = vadd.xlane.f32.xlu1 %v215_v23 }
  0xf5   :  { %209 = vadd.xlane.f32.xlu0 %v208_v25 }
  0xf6   :  { %219 = vadd.xlane.f32.xlu1 %v218_v26 }
 0x17e   :  { %v207_v27 = vpop.xlane.xlu0 %206 }
 0x17f   :  { %v217_v28 = vpop.xlane.xlu1 %216  ;;  %v211_v29 = vadd.f32 1e-06, %v207_v27 }
 0x180   :  { %v221_v30 = vadd.f32 1e-06, %v217_v28 }
 0x182   :  { %v223_v31 = vmax.f32 %v211_v29, %v221_v30  ;;  %v210_v32 = vpop.xlane.xlu0 %209 }
 0x183   :  { %v220_v33 = vpop.xlane.xlu1 %219  ;;  %v212_v34 = vadd.f32 1e-06, %v210_v32 }
 0x184   :  { %v225_v35 = vsub.f32 %v211_v29, %v223_v31  ;;  %v231_v36 = vsub.f32 %v221_v30, %v223_v31  ;;  %v222_v37 = vadd.f32 1e-06, %v220_v33 }
 0x186   :  { %v227_v38 = vmul.f32 1.442695, %v225_v35  ;;  %v233_v39 = vmul.f32 1.442695, %v231_v36  ;;  %v224_v40 = vmax.f32 %v212_v34, %v222_v37 }
 0x188   :  { %345 = vpow2.f32 %v227_v38  ;;  %v226_v41 = vsub.f32 %v212_v34, %v224_v40  ;;  %v232_v42 = vsub.f32 %v222_v37, %v224_v40 }
 0x189   :  { %347 = vpow2.f32 %v233_v39 }
 0x18a   :  { %v229_v43 = vmul.f32 1.442695, %v226_v41  ;;  %v235_v44 = vmul.f32 1.442695, %v232_v42 }
 0x18c   :  { %349 = vpow2.f32 %v229_v43 }
 0x18d   :  { %351 = vpow2.f32 %v235_v44 }
 0x192   :  { %v346_v45 = vpop.eup %345 }
 0x193   :  { %v348_v46 = vpop.eup %347 }
 0x194   :  { %v237_v47 = vadd.f32 %v348_v46, %v346_v45 }
 0x196   :  { %v350_v48 = vpop.eup %349  ;;  %353 = vrcp.f32 %v237_v47 }
 0x197   :  { %v352_v49 = vpop.eup %351 }
 0x198   :  { %v238_v50 = vadd.f32 %v352_v49, %v350_v48 }
 0x19a   :  { %355 = vrcp.f32 %v238_v50 }
 0x1a0   :  { %v354_v51 = vpop.eup %353 }
 0x1a1   :  { %v241_v52 = vmul.f32 %v354_v51, %v346_v45  ;;  %v243_v53 = vmul.f32 %v354_v51, %v348_v46 }
 0x1a3   :  { %v245_v54 = vmul.f32 %v241_v52, %v429_v5  ;;  %v247_v55 = vmul.f32 %v243_v53, %v434_v6  ;;  %254 = vst.msk [vmem:[%s492_s5] sm:$0xff] %vm253_vm2, %v241_v52 }
 0x1a4   :  { %v356_v56 = vpop.eup %355  ;;  %257 = vst.msk [vmem:[%s492_s5] sm:$0xff] %vm256_vm3, %v243_v53 }
 0x1a5   :  { %v242_v57 = vmul.f32 %v356_v56, %v350_v48  ;;  %v244_v58 = vmul.f32 %v356_v56, %v352_v49  ;;  %v249_v59 = vadd.f32 %v247_v55, %v245_v54 }
 0x1a7   :  { %255 = vst.msk [vmem:[%s492_s5 + $0x8] sm:$0xff] %vm253_vm2, %v242_v57  ;;  %v246_v60 = vmul.f32 %v242_v57, %v443_v8  ;;  %v248_v61 = vmul.f32 %v244_v58, %v448_v9 }
 0x1a8   :  { %251 = vst.msk [vmem:[#allocation2] sm:$0xff] %vm29_vm0, %v249_v59 }
 0x1a9   :  { %258 = vst.msk [vmem:[%s492_s5 + $0x8] sm:$0xff] %vm256_vm3, %v244_v58  ;;  %v250_v62 = vadd.f32 %v248_v61, %v246_v60 }
 0x1ab   :  { %252 = vst.msk [vmem:[#allocation2 + $0x8] sm:$0xff] %vm29_vm0, %v250_v62 }
 0x1ac   :  { %368 = shalt.err (!%p365_p4)
}
 0x1ad   :  { %s369_s20 = scalar_lea.hbm %s491_s4, 256 }
 0x1ae   :  { %p370_p5 = scmp.ne.s32.totalorder %s491_s4, %s369_s20  ;;  %p373_p6 = scmp.lt.u32.totalorder %s369_s20, %s491_s4 }
 0x1b0   :  { %p375_p7 = pnand %p373_p6, %p370_p5 }
 0x1b2   :  { %378 = shalt.err (!%p375_p7)
}
 0x1b3   :  { %s382_s24 = smov 128   ;;  %s383_s25 = smov 8  }
 0x1b4   :  { %270 = dma.vmem_to_hbm [thread:$0]  %s265_s12, 256, %s491_s4, [#allocation3], %s382_s24, %s382_s24, %s383_s25  }
 0x1b5   :  { %379 = dma.done.wait [#allocation3], 256  }
 0x1b6   :  { %380 = vsyncadd [#allocation3], 4294967040 }
 0x1b7   :  { %278 = vsyncpa [#allocation3], 1 }

// kernel: tpu_custom_call.1
= control target key start
LH: loop header
LB: loop body
LE: loop exit
PB: predicated region body
PF: predicated region fallthrough
CT: control target
= control target key end

     0   :  { %vm29_vm0 = vcmask 261120   ;;  %s487_s0 = inlined_call_operand.vmem [shape: f32[16,32], index: 0, kind: input, shape index: {}]   ;;  %s488_s1 = inlined_call_operand.vmem [shape: f32[16,32], index: 1, kind: input, shape index: {}]   ;;  %s489_s2 = inlined_call_operand.vmem [shape: f32[32,16], index: 2, kind: input, shape index: {}]   ;;  %s490_s3 = inlined_call_operand.vmem [shape: f32[1,16], index: 3, kind: input, shape index: {}]   ;;  %s491_s4 = inlined_call_operand.hbm [shape: f32[16,32], index: 4, kind: output, shape index: {0}]   ;;  %s492_s5 = inlined_call_operand.vmem [shape: f32[16,2], index: 5, kind: output, shape index: {1}]  }
   0x1   :  { %v24_v0 = vld [vmem:[%s489_s2] sm:$0xff]  ;;  %v25_v1 = vld [vmem:[%s489_s2 + $0x8] sm:$0xff]  ;;  %v26_v2 = vld [vmem:[%s489_s2 + $0x10] sm:$0xff] }
   0x2   :  { %v318_v3 = vpack.c.bf16 %v25_v1, %v24_v0  ;;  %v27_v4 = vld [vmem:[%s489_s2 + $0x18] sm:$0xff]  ;;  %v429_v5 = vld [vmem:[%s487_s0] sm:$0xff] }
   0x3   :  { %v434_v6 = vld [vmem:[%s488_s1] sm:$0xff]  ;;  %v322_v7 = vpack.c.bf16 %v27_v4, %v26_v2  ;;  %304 = vmatprep.mubr.msk.f32.mxu0 %vm29_vm0, %v429_v5 }
   0x4   :  { %315 = vmatprep.mubr.msk.f32.mxu1 %vm29_vm0, %v434_v6 }
   0x5   :  { %11 = vsyncpa [#allocation3], 0  ;;  %319 = vmatprep.subr.bf16.mxu0 %v318_v3  ;;  %327 = vmatprep.subr.bf16.mxu1 %v318_v3  ;;  %v443_v8 = vld [vmem:[%s487_s0 + $0x8] sm:$0xff]  ;;  %v283_v15 = vld [vmem:[%s490_s3] ss:$0 sm:$0xff]  ;;  %vm204_vm1 = vcmask 130048  }
   0x6   :  { %321 = vmatpush3.bf16.msra.mxu0 %v318_v3  ;;  %329 = vmatpush3.bf16.msra.mxu1 %v318_v3  ;;  %v448_v9 = vld [vmem:[%s488_s1 + $0x8] sm:$0xff]  ;;  %vm253_vm2 = vcmask 7168   ;;  %vm256_vm3 = vcmask 15368   ;;  %s381_s11 = smov [#allocation2]  }
   0x7   :  { %323 = vmatprep.subr.bf16.mxu0 %v322_v7  ;;  %331 = vmatprep.subr.bf16.mxu1 %v322_v7  ;;  %s264_s12 = sshll.u32 %s381_s11, 4  ;;  %s265_s12 = int_to_ptr.vmem [resolvable:$true] %s264_s12 }
   0x8   :  { %s357_s17 = scalar_lea.vmem %s265_s12, 256  ;;  %p362_p1 = scmp.lt.s32.totalorder %s265_s12, %s265_s12 }
   0x9   :  { %p358_p0 = scmp.ne.s32.totalorder %s265_s12, %s357_s17  ;;  %p363_p2 = scmp.lt.s32.totalorder %s357_s17, %s357_s17 }
   0xa   :  { %325 = vmatpush3.bf16.msra.mxu0 %v322_v7  ;;  %333 = vmatpush3.bf16.msra.mxu1 %v322_v7 }
   0xb   :  { %p364_p3 = por %p363_p2, %p362_p1 }
   0xd   :  { %305 = vmatmul.mubr.msk.f32.vlgmr.msra.gmra.mrb[0].mxu0 %vm29_vm0, %v443_v8  ;;  %316 = vmatmul.mubr.msk.f32.vlgmr.msra.gmra.mrb[0].mxu1 %vm29_vm0, %v448_v9  ;;  %p365_p4 = pnand %p364_p3, %p358_p0 }
  0xe0   :  { %v306_v10 = vpop.f32.mrb[0].mxu0  ;;  %v317_v11 = vpop.f32.mrb[0].mxu1 }
  0xe1   :  { %337 = vtanh.f32 %v306_v10  ;;  %v102_v12 = vpop.f32.mrb[1].mxu0  ;;  %v185_v13 = vpop.f32.mrb[1].mxu1 }
  0xe2   :  { %339 = vtanh.f32 %v317_v11 }
  0xe3   :  { %341 = vtanh.f32 %v102_v12 }
  0xe4   :  { %343 = vtanh.f32 %v185_v13 }
  0xeb   :  { %v338_v14 = vpop.eup %337 }
  0xec   :  { %v340_v16 = vpop.eup %339  ;;  %v203_v22 = vmul.f32 %v338_v14, %v283_v15 }
  0xed   :  { %v342_v17 = vpop.eup %341  ;;  %v214_v24 = vmul.f32 %v340_v16, %v283_v15 }
  0xee   :  { %v344_v18 = vpop.eup %343  ;;  %v202_v19 = vmul.f32 %v342_v17, %v283_v15  ;;  %v208_v25 = vsel %vm204_vm1, %v203_v22, 0.0 }
  0xef   :  { %v213_v20 = vmul.f32 %v344_v18, %v283_v15  ;;  %v218_v26 = vsel %vm204_vm1, %v214_v24, 0.0 }
  0xf0   :  { %v205_v21 = vsel %vm204_vm1, %v202_v19, 0.0 }
  0xf1   :  { %v215_v23 = vsel %vm204_vm1, %v213_v20, 0.0  ;;  %206 = vadd.xlane.f32.xlu0 %v205_v21 }
  0xf2   :  { %216 = vadd.xlane.f32.xlu1 %v215_v23 }
  0xf5   :  { %209 = vadd.xlane.f32.xlu0 %v208_v25 }
  0xf6   :  { %219 = vadd.xlane.f32.xlu1 %v218_v26 }
 0x17e   :  { %v207_v27 = vpop.xlane.xlu0 %206 }
 0x17f   :  { %v217_v28 = vpop.xlane.xlu1 %216  ;;  %v211_v29 = vadd.f32 1e-06, %v207_v27 }
 0x180   :  { %v221_v30 = vadd.f32 1e-06, %v217_v28 }
 0x182   :  { %v223_v31 = vmax.f32 %v211_v29, %v221_v30  ;;  %v210_v32 = vpop.xlane.xlu0 %209 }
 0x183   :  { %v220_v33 = vpop.xlane.xlu1 %219  ;;  %v212_v34 = vadd.f32 1e-06, %v210_v32 }
 0x184   :  { %v225_v35 = vsub.f32 %v211_v29, %v223_v31  ;;  %v231_v36 = vsub.f32 %v221_v30, %v223_v31  ;;  %v222_v37 = vadd.f32 1e-06, %v220_v33 }
 0x186   :  { %v227_v38 = vmul.f32 1.442695, %v225_v35  ;;  %v233_v39 = vmul.f32 1.442695, %v231_v36  ;;  %v224_v40 = vmax.f32 %v212_v34, %v222_v37 }
 0x188   :  { %345 = vpow2.f32 %v227_v38  ;;  %v226_v41 = vsub.f32 %v212_v34, %v224_v40  ;;  %v232_v42 = vsub.f32 %v222_v37, %v224_v40 }
 0x189   :  { %347 = vpow2.f32 %v233_v39 }
 0x18a   :  { %v229_v43 = vmul.f32 1.442695, %v226_v41  ;;  %v235_v44 = vmul.f32 1.442695, %v232_v42 }
 0x18c   :  { %349 = vpow2.f32 %v229_v43 }
 0x18d   :  { %351 = vpow2.f32 %v235_v44 }
 0x192   :  { %v346_v45 = vpop.eup %345 }
 0x193   :  { %v348_v46 = vpop.eup %347 }
 0x194   :  { %v237_v47 = vadd.f32 %v348_v46, %v346_v45 }
 0x196   :  { %v350_v48 = vpop.eup %349  ;;  %353 = vrcp.f32 %v237_v47 }
 0x197   :  { %v352_v49 = vpop.eup %351 }
 0x198   :  { %v238_v50 = vadd.f32 %v352_v49, %v350_v48 }
 0x19a   :  { %355 = vrcp.f32 %v238_v50 }
 0x1a0   :  { %v354_v51 = vpop.eup %353 }
 0x1a1   :  { %v241_v52 = vmul.f32 %v354_v51, %v346_v45  ;;  %v243_v53 = vmul.f32 %v354_v51, %v348_v46 }
 0x1a3   :  { %v245_v54 = vmul.f32 %v241_v52, %v429_v5  ;;  %v247_v55 = vmul.f32 %v243_v53, %v434_v6  ;;  %254 = vst.msk [vmem:[%s492_s5] sm:$0xff] %vm253_vm2, %v241_v52 }
 0x1a4   :  { %v356_v56 = vpop.eup %355  ;;  %257 = vst.msk [vmem:[%s492_s5] sm:$0xff] %vm256_vm3, %v243_v53 }
 0x1a5   :  { %v242_v57 = vmul.f32 %v356_v56, %v350_v48  ;;  %v244_v58 = vmul.f32 %v356_v56, %v352_v49  ;;  %v249_v59 = vadd.f32 %v247_v55, %v245_v54 }
 0x1a7   :  { %255 = vst.msk [vmem:[%s492_s5 + $0x8] sm:$0xff] %vm253_vm2, %v242_v57  ;;  %v246_v60 = vmul.f32 %v242_v57, %v443_v8  ;;  %v248_v61 = vmul.f32 %v244_v58, %v448_v9 }
 0x1a8   :  { %251 = vst.msk [vmem:[#allocation2] sm:$0xff] %vm29_vm0, %v249_v59 }
 0x1a9   :  { %258 = vst.msk [vmem:[%s492_s5 + $0x8] sm:$0xff] %vm256_vm3, %v244_v58  ;;  %v250_v62 = vadd.f32 %v248_v61, %v246_v60 }
 0x1ab   :  { %252 = vst.msk [vmem:[#allocation2 + $0x8] sm:$0xff] %vm29_vm0, %v250_v62 }
 0x1ac   :  { %368 = shalt.err (!%p365_p4)
}
 0x1ad   :  { %s369_s20 = scalar_lea.hbm %s491_s4, 256 }
 0x1ae   :  { %p370_p5 = scmp.ne.s32.totalorder %s491_s4, %s369_s20  ;;  %p373_p6 = scmp.lt.u32.totalorder %s369_s20, %s491_s4 }
 0x1b0   :  { %p375_p7 = pnand %p373_p6, %p370_p5 }
 0x1b2   :  { %378 = shalt.err (!%p375_p7)
}
 0x1b3   :  { %s382_s24 = smov 128   ;;  %s383_s25 = smov 8  }
 0x1b4   :  { %270 = dma.vmem_to_hbm [thread:$0]  %s265_s12, 256, %s491_s4, [#allocation3], %s382_s24, %s382_s24, %s383_s25  }
 0x1b5   :  { %379 = dma.done.wait [#allocation3], 256  }
 0x1b6   :  { %380 = vsyncadd [#allocation3], 4294967040 }
 0x1b7   :  { %278 = vsyncpa [#allocation3], 1 }

</bundles_post_ra>
